<compile_context>
chip_gen: v7x
topology: tpu7x:2x2x1
jax: 0.10.0
libtpu: 0.0.40
codegen_flags: <defaults>
</compile_context>

<pallas_src>
import jax
import jax.numpy as jnp
from jax import lax
from jax.experimental import pallas as pl
from jax.experimental.pallas import tpu as pltpu

LN_EPS = 1e-5


def _round_up(n, m):
    return ((n + m - 1) // m) * m


def _classifier_kernel(x_ref, gamma_ref, beta_ref, w_ref, bias_ref, o_ref):
    # x_ref:     (tb, D)    row tile of inputs (x dtype)
    # gamma_ref: (1, D)     LayerNorm scale (f32, single-buffered)
    # beta_ref:  (1, D)     LayerNorm shift (f32, single-buffered)
    # w_ref:     (D, tn)    Linear weight tile, transposed + lane-padded (matmul dtype)
    # bias_ref:  (1, tn)    Linear bias tile (f32)
    # o_ref:     (tb, Co)   logits tile; Co may be < tn (lane padding dropped here)
    x = x_ref[...].astype(jnp.float32)

    # LayerNorm statistics in f32 (recomputed per class tile; hidden under MXU).
    mean = jnp.mean(x, axis=-1, keepdims=True)
    xc = x - mean
    var = jnp.mean(xc * xc, axis=-1, keepdims=True)
    inv = lax.rsqrt(var + LN_EPS)                       # EUP op
    xn = xc * inv * gamma_ref[...] + beta_ref[...]

    # MXU matmul in w_ref's dtype (bf16 feed when requested), f32 accumulate.
    logits = jnp.dot(xn.astype(w_ref.dtype), w_ref[...],
                     preferred_element_type=jnp.float32)
    logits = logits + bias_ref[...]

    c_out = o_ref.shape[-1]
    if c_out != logits.shape[-1]:                       # static: drop lane padding
        logits = logits[:, :c_out]
    o_ref[...] = logits.astype(o_ref.dtype)


def prepare_classifier_params(gamma, beta, weight, bias, *,
                              mm_dtype=jnp.float32, max_class_block=2048):
    """One-time parameter prep (transpose, lane padding, dtype casts).

    Hoisted out of the per-call path so repeated forward calls only pay for the
    kernel itself (no D x C transpose/pad pass in XLA per call).

    weight: (num_classes, dim)  [PyTorch nn.Linear layout]
    bias:   (num_classes,)      gamma/beta: (dim,)
    """
    num_classes, dim = weight.shape

    # Lane-dense class padding: 256-aligned for the 2x256^2 MXUs (v6e/v7x) when
    # the head is big enough, else 128 (minimum lane width / v5e MXU tile).
    lane = 256 if num_classes > 128 else 128
    c_padded = _round_up(num_classes, lane)
    # Class tile width (grid axis 1).  Single tile when the whole padded head fits.
    tn = min(c_padded, _round_up(max_class_block, 256))

    w_t = weight.T.astype(mm_dtype)                     # (dim, num_classes)
    bias_f32 = bias.astype(jnp.float32)
    if c_padded != num_classes:
        w_t = jnp.pad(w_t, ((0, 0), (0, c_padded - num_classes)))
        bias_f32 = jnp.pad(bias_f32, (0, c_padded - num_classes))

    return {
        "gamma2d": gamma.reshape(1, dim).astype(jnp.float32),
        "beta2d": beta.reshape(1, dim).astype(jnp.float32),
        "w_t": w_t,
        "bias2d": bias_f32.reshape(1, c_padded),
        "dim": dim,
        "num_classes": num_classes,
        "c_padded": c_padded,
        "tn": tn,
        "mm_dtype": mm_dtype,
    }


def classifier_forward(x, params, *, block_rows=512, out_dtype=None):
    """x: (..., dim) -> logits (..., num_classes) using prepared params."""
    dim = params["dim"]
    num_classes = params["num_classes"]
    c_padded = params["c_padded"]
    tn = params["tn"]
    assert x.shape[-1] == dim, (x.shape, dim)

    lead_shape = x.shape[:-1]
    x2d = x.reshape(-1, dim)
    n_rows = x2d.shape[0]
    out_dtype = x.dtype if out_dtype is None else out_dtype

    n_class_tiles = pl.cdiv(c_padded, tn)
    # Single class tile -> kernel drops the lane padding itself, so the HBM output
    # is exactly num_classes wide (no padded write + separate slice pass).
    narrow_out = n_class_tiles == 1
    out_cols = num_classes if narrow_out else c_padded

    x_bytes = jnp.dtype(x.dtype).itemsize
    mm_bytes = jnp.dtype(params["mm_dtype"]).itemsize
    out_bytes = jnp.dtype(out_dtype).itemsize

    # Per-TensorCore VMEM capacity; fall back to the smallest (v7x, 64 MiB).
    try:
        vmem_cap = int(pltpu.get_tpu_info().vmem_capacity_bytes)
    except Exception:
        vmem_cap = 64 * 1024 * 1024
    vmem_budget = int(vmem_cap * 0.6)

    # Row tile: bf16 packs 16 rows per vreg sublane group, so align to 16 there.
    row_align = 16 if x.dtype == jnp.bfloat16 else 8
    tb = _round_up(min(block_rows, _round_up(n_rows, row_align)), row_align)
    tb = max(row_align, tb)

    # Invariant operands are single-buffered; class-tiled W/bias are double-buffered.
    w_bufs = 1 if n_class_tiles == 1 else 2

    def vmem_estimate(tb_):
        fixed = w_bufs * dim * tn * mm_bytes            # W^T tile(s)
        fixed += w_bufs * tn * 4                        # bias tile(s)
        fixed += 2 * dim * 4                            # gamma + beta (1 buf each)
        per_row = 2 * dim * x_bytes                     # x tile, double-buffered
        per_row += 2 * out_cols * out_bytes             # out tile, double-buffered
        per_row += (2 * dim + tn) * 4                   # f32 temporaries (x/xn, logits)
        return fixed + tb_ * per_row

    min_tb = 4 * row_align
    while tb > min_tb and vmem_estimate(tb) > vmem_budget:
        tb = max(min_tb, _round_up(tb // 2, row_align))

    # Explicit scoped-VMEM limit with headroom over the estimate (covers compiler
    # scratch on top of the counted f32 temporaries); floor 32 MiB, cap < capacity.
    vmem_limit = int(min(0.9 * vmem_cap,
                         max(32 * 1024 * 1024,
                             1.5 * vmem_estimate(tb) + (8 << 20))))

    grid = (pl.cdiv(n_rows, tb), n_class_tiles)
    invariant = pl.Buffered(1)

    if n_class_tiles == 1:
        w_spec = pl.BlockSpec((dim, tn), lambda i, j: (0, j), pipeline_mode=invariant)
        b_spec = pl.BlockSpec((1, tn), lambda i, j: (0, j), pipeline_mode=invariant)
        o_spec = pl.BlockSpec((tb, out_cols), lambda i, j: (i, 0))
    else:
        w_spec = pl.BlockSpec((dim, tn), lambda i, j: (0, j))
        b_spec = pl.BlockSpec((1, tn), lambda i, j: (0, j))
        o_spec = pl.BlockSpec((tb, tn), lambda i, j: (i, j))

    out = pl.pallas_call(
        _classifier_kernel,
        out_shape=jax.ShapeDtypeStruct((n_rows, out_cols), out_dtype),
        grid_spec=pl.GridSpec(
            grid=grid,
            in_specs=[
                pl.BlockSpec((tb, dim), lambda i, j: (i, 0)),            # x row tile
                pl.BlockSpec((1, dim), lambda i, j: (0, 0),
                             pipeline_mode=invariant),                   # gamma
                pl.BlockSpec((1, dim), lambda i, j: (0, 0),
                             pipeline_mode=invariant),                   # beta
                w_spec,                                                  # W^T tile
                b_spec,                                                  # bias tile
            ],
            out_specs=o_spec,
        ),
        compiler_params=pltpu.CompilerParams(
            dimension_semantics=("parallel", "arbitrary"),
            vmem_limit_bytes=vmem_limit,
        ),
    )(x2d, params["gamma2d"], params["beta2d"], params["w_t"], params["bias2d"])

    if (not narrow_out) and c_padded != num_classes:
        out = out[:, :num_classes]
    return out.reshape(*lead_shape, num_classes)


def classifier_apply(x, gamma, beta, weight, bias, *, block_rows=512,
                     out_dtype=None, prefer_bf16_matmul=False,
                     max_class_block=2048):
    """Convenience wrapper (prepares params per call).  For repeated calls, use
    prepare_classifier_params once + classifier_forward."""
    mm_dtype = (jnp.bfloat16
                if (x.dtype == jnp.bfloat16 or prefer_bf16_matmul)
                else jnp.float32)
    params = prepare_classifier_params(gamma, beta, weight, bias,
                                       mm_dtype=mm_dtype,
                                       max_class_block=max_class_block)
    return classifier_forward(x, params, block_rows=block_rows, out_dtype=out_dtype)


def _reference(x, gamma, beta, weight, bias):
    xf = x.astype(jnp.float32)
    mean = jnp.mean(xf, axis=-1, keepdims=True)
    var = jnp.mean((xf - mean) ** 2, axis=-1, keepdims=True)
    xn = (xf - mean) * lax.rsqrt(var + LN_EPS) * gamma.astype(jnp.float32) \
        + beta.astype(jnp.float32)
    return jnp.dot(xn, weight.T.astype(jnp.float32),
                   precision=lax.Precision.HIGHEST) + bias.astype(jnp.float32)


if __name__ == "__main__":
    key = jax.random.PRNGKey(0)
    keys = jax.random.split(key, 12)

    # --- Head 1: dim=32, num_classes=16 (single class tile, narrow output) ---
    batch, seq, dim, num_classes = 2, 8, 32, 16
    x = jax.random.normal(keys[0], (batch, seq, dim), dtype=jnp.float32)
    gamma = 1.0 + 0.1 * jax.random.normal(keys[1], (dim,), dtype=jnp.float32)
    beta = 0.1 * jax.random.normal(keys[2], (dim,), dtype=jnp.float32)
    weight = jax.random.normal(keys[3], (num_classes, dim),
                               dtype=jnp.float32) / jnp.sqrt(dim)
    bias = 0.05 * jax.random.normal(keys[4], (num_classes,), dtype=jnp.float32)

    params = prepare_classifier_params(gamma, beta, weight, bias)  # hoisted prep

    # Case 1: standard small input.
    out = jax.block_until_ready(classifier_forward(x, params))
    ref = _reference(x, gamma, beta, weight, bias)
    assert out.shape == (batch, seq, num_classes), out.shape
    assert jnp.allclose(out, ref, atol=1e-4, rtol=1e-4), \
        float(jnp.max(jnp.abs(out - ref)))

    # Case 2: ragged row count (20 rows, block_rows=8 -> masked tail row block).
    x2 = jax.random.normal(keys[5], (4, 5, dim), dtype=jnp.float32)
    out2 = jax.block_until_ready(classifier_forward(x2, params, block_rows=8))
    ref2 = _reference(x2, gamma, beta, weight, bias)
    assert out2.shape == (4, 5, num_classes), out2.shape
    assert jnp.allclose(out2, ref2, atol=1e-4, rtol=1e-4), \
        float(jnp.max(jnp.abs(out2 - ref2)))

    # Case 3: larger head with the class dimension tiled across grid axis 1
    # (c_padded=1024, tn=512 -> 2 class tiles, streamed W^T).
    dim3, nc3 = 128, 1000
    x3 = jax.random.normal(keys[6], (4, 16, dim3), dtype=jnp.float32)
    gamma3 = 1.0 + 0.1 * jax.random.normal(keys[7], (dim3,), dtype=jnp.float32)
    beta3 = 0.1 * jax.random.normal(keys[8], (dim3,), dtype=jnp.float32)
    w3 = jax.random.normal(keys[9], (nc3, dim3), dtype=jnp.float32) / jnp.sqrt(dim3)
    b3 = 0.05 * jax.random.normal(keys[10], (nc3,), dtype=jnp.float32)
    out3 = jax.block_until_ready(
        classifier_apply(x3, gamma3, beta3, w3, b3, max_class_block=512))
    ref3 = _reference(x3, gamma3, beta3, w3, b3)
    assert out3.shape == (4, 16, nc3), out3.shape
    assert jnp.allclose(out3, ref3, atol=1e-3, rtol=1e-3), \
        float(jnp.max(jnp.abs(out3 - ref3)))

    # Case 4: bf16 activations, bf16 MXU feed (f32 accumulate), f32 logits out.
    x4 = x.astype(jnp.bfloat16)
    out4 = jax.block_until_ready(
        classifier_apply(x4, gamma, beta, weight, bias, out_dtype=jnp.float32))
    ref4 = _reference(x4, gamma, beta, weight, bias)
    assert out4.shape == (batch, seq, num_classes), out4.shape
    assert out4.dtype == jnp.float32, out4.dtype
    assert jnp.allclose(out4, ref4, atol=5e-2, rtol=5e-2), \
        float(jnp.max(jnp.abs(out4 - ref4)))

    print("KERNEL_OK")
</pallas_src>

<mosaic_0001>
module attributes {stable_mosaic.version = 11 : i64} {
  func.func @_classifier_kernel(%arg0: i32, %arg1: i32, %arg2: memref<16x32xf32, #tpu.memory_space<vmem>>, %arg3: memref<1x32xf32, #tpu.memory_space<vmem>>, %arg4: memref<1x32xf32, #tpu.memory_space<vmem>>, %arg5: memref<32x128xf32, #tpu.memory_space<vmem>>, %arg6: memref<1x128xf32, #tpu.memory_space<vmem>>, %arg7: memref<16x16xf32, #tpu.memory_space<vmem>>) attributes {dimension_semantics = [#tpu.dimension_semantics<parallel>, #tpu.dimension_semantics<arbitrary>], iteration_bounds = array<i64: 1, 1>, scalar_prefetch = 0 : i64, scratch_operands = 0 : i64, tpu.core_type = #tpu.core_type<tc>, window_params = [{transform_indices = @transform_0, window_bounds = array<i64: 16, 32>}, {pipeline_mode = #tpu.pipeline_mode<synchronous>, transform_indices = @transform_1, window_bounds = array<i64: 1, 32>}, {pipeline_mode = #tpu.pipeline_mode<synchronous>, transform_indices = @transform_2, window_bounds = array<i64: 1, 32>}, {pipeline_mode = #tpu.pipeline_mode<synchronous>, transform_indices = @transform_3, window_bounds = array<i64: 32, 128>}, {pipeline_mode = #tpu.pipeline_mode<synchronous>, transform_indices = @transform_4, window_bounds = array<i64: 1, 128>}, {transform_indices = @transform_5, window_bounds = array<i64: 16, 16>}]} {
    %c0 = arith.constant 0 : index
    %c0_0 = arith.constant 0 : index
    %0 = vector.load %arg2[%c0, %c0_0] : memref<16x32xf32, #tpu.memory_space<vmem>>, vector<16x32xf32>
    %cst = arith.constant dense<0.000000e+00> : vector<16xf32>
    %1 = vector.multi_reduction <add>, %0, %cst [1] : vector<16x32xf32> to vector<16xf32>
    %2 = vector.shape_cast %1 : vector<16xf32> to vector<16x1xf32>
    %cst_1 = arith.constant 3.200000e+01 : f32
    %3 = vector.broadcast %cst_1 : f32 to vector<16x1xf32>
    %4 = arith.divf %2, %3 : vector<16x1xf32>
    %5 = vector.broadcast %4 : vector<16x1xf32> to vector<16x32xf32>
    %6 = arith.subf %0, %5 : vector<16x32xf32>
    %7 = arith.mulf %6, %6 : vector<16x32xf32>
    %cst_2 = arith.constant dense<0.000000e+00> : vector<16xf32>
    %8 = vector.multi_reduction <add>, %7, %cst_2 [1] : vector<16x32xf32> to vector<16xf32>
    %9 = vector.shape_cast %8 : vector<16xf32> to vector<16x1xf32>
    %cst_3 = arith.constant 3.200000e+01 : f32
    %10 = vector.broadcast %cst_3 : f32 to vector<16x1xf32>
    %11 = arith.divf %9, %10 : vector<16x1xf32>
    %cst_4 = arith.constant 9.99999974E-6 : f32
    %12 = vector.broadcast %cst_4 : f32 to vector<16x1xf32>
    %13 = arith.addf %11, %12 : vector<16x1xf32>
    %14 = math.rsqrt %13 : vector<16x1xf32>
    %15 = vector.broadcast %14 : vector<16x1xf32> to vector<16x32xf32>
    %16 = arith.mulf %6, %15 : vector<16x32xf32>
    %c0_5 = arith.constant 0 : index
    %c0_6 = arith.constant 0 : index
    %17 = vector.load %arg3[%c0_5, %c0_6] : memref<1x32xf32, #tpu.memory_space<vmem>>, vector<1x32xf32>
    %18 = vector.broadcast %17 : vector<1x32xf32> to vector<16x32xf32>
    %19 = arith.mulf %16, %18 : vector<16x32xf32>
    %c0_7 = arith.constant 0 : index
    %c0_8 = arith.constant 0 : index
    %20 = vector.load %arg4[%c0_7, %c0_8] : memref<1x32xf32, #tpu.memory_space<vmem>>, vector<1x32xf32>
    %21 = vector.broadcast %20 : vector<1x32xf32> to vector<16x32xf32>
    %22 = arith.addf %19, %21 : vector<16x32xf32>
    %c0_9 = arith.constant 0 : index
    %c0_10 = arith.constant 0 : index
    %23 = vector.load %arg5[%c0_9, %c0_10] : memref<32x128xf32, #tpu.memory_space<vmem>>, vector<32x128xf32>
    %cst_11 = arith.constant dense<0.000000e+00> : vector<16x128xf32>
    %24 = tpu.matmul %22, %23, %cst_11 {dimension_numbers = #tpu.dot_dimension_numbers<[1], [0], [0], [1], [0, 0, 1, 1], [], []>} : vector<16x32xf32>, vector<32x128xf32>, vector<16x128xf32> -> vector<16x128xf32>
    %c0_12 = arith.constant 0 : index
    %c0_13 = arith.constant 0 : index
    %25 = vector.load %arg6[%c0_12, %c0_13] : memref<1x128xf32, #tpu.memory_space<vmem>>, vector<1x128xf32>
    %26 = vector.broadcast %25 : vector<1x128xf32> to vector<16x128xf32>
    %27 = arith.addf %24, %26 : vector<16x128xf32>
    %28 = vector.extract_strided_slice %27 {offsets = [0, 0], sizes = [16, 16], strides = [1, 1]} : vector<16x128xf32> to vector<16x16xf32>
    %c0_14 = arith.constant 0 : index
    %c0_15 = arith.constant 0 : index
    %29 = vector.load %arg7[%c0_14, %c0_15] : memref<16x16xf32, #tpu.memory_space<vmem>>, vector<16x16xf32>
    tpu.vector_store %arg7[%c0_14, %c0_15], %28 {strides = array<i32>} : memref<16x16xf32, #tpu.memory_space<vmem>>, vector<16x16xf32>,
    return
  }
  func.func @transform_0(%arg0: i32, %arg1: i32) -> (i32, i32) {
    %c0_i32 = arith.constant 0 : i32
    %c0_i32_0 = arith.constant 0 : i32
    return %arg0, %c0_i32 : i32, i32
  }
  func.func @transform_1(%arg0: i32, %arg1: i32) -> (i32, i32) {
    %c0_i32 = arith.constant 0 : i32
    %c0_i32_0 = arith.constant 0 : i32
    %c0_i32_1 = arith.constant 0 : i32
    return %c0_i32, %c0_i32_0 : i32, i32
  }
  func.func @transform_2(%arg0: i32, %arg1: i32) -> (i32, i32) {
    %c0_i32 = arith.constant 0 : i32
    %c0_i32_0 = arith.constant 0 : i32
    %c0_i32_1 = arith.constant 0 : i32
    return %c0_i32, %c0_i32_0 : i32, i32
  }
  func.func @transform_3(%arg0: i32, %arg1: i32) -> (i32, i32) {
    %c0_i32 = arith.constant 0 : i32
    %c0_i32_0 = arith.constant 0 : i32
    return %c0_i32, %arg1 : i32, i32
  }
  func.func @transform_4(%arg0: i32, %arg1: i32) -> (i32, i32) {
    %c0_i32 = arith.constant 0 : i32
    %c0_i32_0 = arith.constant 0 : i32
    return %c0_i32, %arg1 : i32, i32
  }
  func.func @transform_5(%arg0: i32, %arg1: i32) -> (i32, i32) {
    %c0_i32 = arith.constant 0 : i32
    %c0_i32_0 = arith.constant 0 : i32
    return %arg0, %c0_i32 : i32, i32
  }
}

</mosaic_0001>

<bundles_post_ra>
// kernel: tpu_custom_call.1
= control target key start
LH: loop header
LB: loop body
LE: loop exit
PB: predicated region body
PF: predicated region fallthrough
CT: control target
= control target key end

     0   :  { %10 = vsyncpa [#allocation3], 0  ;;  %s416_s0 = inlined_call_operand.hbm [shape: f32[16,32], index: 0, kind: input, shape index: {}]   ;;  %s417_s1 = inlined_call_operand.vmem [shape: f32[1,32], index: 1, kind: input, shape index: {}]   ;;  %s418_s2 = inlined_call_operand.vmem [shape: f32[1,32], index: 2, kind: input, shape index: {}]   ;;  %s419_s3 = inlined_call_operand.hbm [shape: f32[32,128], index: 3, kind: input, shape index: {}]   ;;  %s420_s4 = inlined_call_operand.vmem [shape: f32[1,128], index: 4, kind: input, shape index: {}]   ;;  %s421_s5 = inlined_call_operand.hbm [shape: f32[16,16], index: 5, kind: output, shape index: {}]  }
   0x1   :  { %11 = vsyncpa [#allocation6], 0 }
   0x2   :  { %12 = vsyncpa [#allocation4], 0  ;;  %s321_s18 = smov [#allocation2]   ;;  %s249_s22 = scalar_lea.hbm %s416_s0, 256 }
   0x3   :  { %s18_s19 = sshll.u32 %s321_s18, 4  ;;  %p250_p0 = scmp.ne.s32.totalorder %s416_s0, %s249_s22  ;;  %s19_s19 = int_to_ptr.vmem [resolvable:$true] %s18_s19 }
   0x4   :  { %p253_p1 = scmp.lt.u32.totalorder %s249_s22, %s416_s0 }
   0x6   :  { %p255_p2 = pnand %p253_p1, %p250_p0 }
   0x8   :  { %258 = shalt.err (!%p255_p2)
}
   0x9   :  { %s259_s27 = scalar_lea.vmem %s19_s19, 256  ;;  %p264_p4 = scmp.lt.s32.totalorder %s19_s19, %s19_s19 }
   0xa   :  { %p260_p3 = scmp.ne.s32.totalorder %s19_s19, %s259_s27  ;;  %p265_p5 = scmp.lt.s32.totalorder %s259_s27, %s259_s27 }
   0xc   :  { %p266_p6 = por %p265_p5, %p264_p4 }
   0xe   :  { %p267_p7 = pnand %p266_p6, %p260_p3 }
  0x10   :  { %270 = shalt.err (!%p267_p7)
}
  0x11   :  { %s322_s28 = smov 128   ;;  %s323_s29 = smov 8  }
  0x12   :  { %24 = dma.hbm_to_vmem [thread:$0]  %s416_s0, 256, %s19_s19, [#allocation3], %s322_s28, %s322_s28, %s323_s29  }
  0x13   :  { %s324_s7 = smov [#allocation5]   ;;  %s271_s11 = scalar_lea.hbm %s419_s3, 512 }
  0x14   :  { %s34_s8 = sshll.u32 %s324_s7, 4  ;;  %p272_p8 = scmp.ne.s32.totalorder %s419_s3, %s271_s11  ;;  %s35_s8 = int_to_ptr.vmem [resolvable:$true] %s34_s8 }
  0x15   :  { %p275_p9 = scmp.lt.u32.totalorder %s271_s11, %s419_s3 }
  0x17   :  { %p277_p10 = pnand %p275_p9, %p272_p8 }
  0x19   :  { %280 = shalt.err (!%p277_p10)
}
  0x1a   :  { %s281_s16 = scalar_lea.vmem %s35_s8, 512  ;;  %p286_p12 = scmp.lt.s32.totalorder %s35_s8, %s35_s8 }
  0x1b   :  { %p282_p11 = scmp.ne.s32.totalorder %s35_s8, %s281_s16  ;;  %p287_p13 = scmp.lt.s32.totalorder %s281_s16, %s281_s16 }
  0x1d   :  { %p288_p0 = por %p287_p13, %p286_p12 }
  0x1f   :  { %p289_p1 = pnand %p288_p0, %p282_p11 }
  0x21   :  { %292 = shalt.err (!%p289_p1)
}
  0x22   :  { %40 = dma.hbm_to_vmem [thread:$0]  %s419_s3, 512, %s35_s8, [#allocation6], %s322_s28, %s322_s28, %s323_s29  }
  0x23   :  { %315 = dma.done.wait [#allocation3], 256  }
  0x24   :  { %316 = vsyncadd [#allocation3], 4294967040 }
  0x25   :  { %317 = dma.done.wait [#allocation6], 512  }
  0x26   :  { %318 = vsyncadd [#allocation6], 4294966784  ;;  %vm51_vm0 = vcmask 261120   ;;  %v49_v0 = vld [vmem:[#allocation2] sm:$0xff]  ;;  %v50_v1 = vld [vmem:[#allocation2 + $0x8] sm:$0xff]  ;;  %vm189_vm1 = vcmask 130048  }
  0x27   :  { %v52_v2 = vsel %vm51_vm0, %v49_v0, 0.0  ;;  %v55_v3 = vsel %vm51_vm0, %v50_v1, 0.0  ;;  %v97_v14 = vld [vmem:[#allocation5] sm:$0xff]  ;;  %v98_v15 = vld [vmem:[#allocation5 + $0x8] sm:$0xff]  ;;  %v99_v16 = vld [vmem:[#allocation5 + $0x10] sm:$0xff] }
  0x28   :  { %53 = vadd.xlane.f32.xlu0 %v52_v2  ;;  %v232_v17 = vpack.c.bf16 %v98_v15, %v97_v14  ;;  %v100_v18 = vld [vmem:[#allocation5 + $0x18] sm:$0xff]  ;;  %v210_v27 = vld [vmem:[%s417_s1] ss:$0 sm:$0xff]  ;;  %s325_s1 = smov [#allocation7]  }
  0x29   :  { %v236_v19 = vpack.c.bf16 %v100_v18, %v99_v16  ;;  %v211_v29 = vld [vmem:[%s418_s2] ss:$0 sm:$0xff]  ;;  %s197_s23 = sshll.u32 %s325_s1, 4  ;;  %s198_s23 = int_to_ptr.vmem [resolvable:$true] %s197_s23 }
  0x2a   :  { %233 = vmatprep.subr.bf16.mxu0 %v232_v17  ;;  %v212_v36 = vld [vmem:[%s420_s4] ss:$0 sm:$0xff]  ;;  %s293_s2 = scalar_lea.vmem %s198_s23, 256  ;;  %p298_p3 = scmp.lt.s32.totalorder %s198_s23, %s198_s23 }
  0x2b   :  { %235 = vmatpush3.bf16.msra.mxu0 %v232_v17  ;;  %p294_p2 = scmp.ne.s32.totalorder %s198_s23, %s293_s2  ;;  %p299_p4 = scmp.lt.s32.totalorder %s293_s2, %s293_s2 }
  0x2c   :  { %56 = vadd.xlane.f32.xlu0 %v55_v3  ;;  %237 = vmatprep.subr.bf16.mxu0 %v236_v19 }
  0x2d   :  { %p300_p5 = por %p299_p4, %p298_p3 }
  0x2f   :  { %239 = vmatpush3.bf16.msra.mxu0 %v236_v19  ;;  %p301_p6 = pnand %p300_p5, %p294_p2 }
  0xb5   :  { %v54_v4 = vpop.xlane.xlu0 %53 }
  0xb6   :  { %v59_v5 = vmul.f32 0.03125, %v54_v4 }
  0xb8   :  { %v61_v6 = vsub.f32 %v49_v0, %v59_v5 }
  0xb9   :  { %v57_v7 = vpop.xlane.xlu0 %56 }
  0xba   :  { %v60_v8 = vmul.f32 0.03125, %v57_v7  ;;  %v63_v9 = vmul.f32 %v61_v6, %v61_v6 }
  0xbc   :  { %v62_v10 = vsub.f32 %v50_v1, %v60_v8  ;;  %v65_v11 = vsel %vm51_vm0, %v63_v9, 0.0 }
  0xbd   :  { %66 = vadd.xlane.f32.xlu1 %v65_v11 }
  0xbe   :  { %v64_v12 = vmul.f32 %v62_v10, %v62_v10 }
  0xc0   :  { %v68_v13 = vsel %vm51_vm0, %v64_v12, 0.0 }
  0xc1   :  { %69 = vadd.xlane.f32.xlu1 %v68_v13 }
 0x14a   :  { %v67_v20 = vpop.xlane.xlu1 %66 }
 0x14b   :  { %v71_v21 = vmul.f32 0.03125, %v67_v20 }
 0x14d   :  { %v73_v22 = vadd.f32 1e-05, %v71_v21 }
 0x14e   :  { %v70_v23 = vpop.xlane.xlu1 %69 }
 0x14f   :  { %245 = vrsqrt.f32 %v73_v22  ;;  %v72_v24 = vmul.f32 0.03125, %v70_v23 }
 0x151   :  { %v74_v25 = vadd.f32 1e-05, %v72_v24 }
 0x153   :  { %247 = vrsqrt.f32 %v74_v25 }
 0x159   :  { %v246_v26 = vpop.eup %245 }
 0x15a   :  { %v77_v28 = vmul.f32 %v246_v26, %v61_v6 }
 0x15c   :  { %v86_v30 = vmul.f32 %v210_v27, %v77_v28 }
 0x15d   :  { %v248_v31 = vpop.eup %247 }
 0x15e   :  { %v78_v32 = vmul.f32 %v248_v31, %v62_v10  ;;  %v95_v33 = vadd.f32 %v211_v29, %v86_v30 }
 0x160   :  { %v87_v34 = vmul.f32 %v210_v27, %v78_v32  ;;  %229 = vmatprep.mubr.msk.f32.mxu0 %vm51_vm0, %v95_v33 }
 0x162   :  { %v96_v35 = vadd.f32 %v211_v29, %v87_v34 }
 0x164   :  { %230 = vmatmul.mubr.msk.f32.vlgmr.msra.gmra.mrb[0].mxu0 %vm51_vm0, %v96_v35 }
 0x237   :  { %v231_v37 = vpop.f32.mrb[0].mxu0 }
 0x238   :  { %v186_v38 = vadd.f32 %v231_v37, %v212_v36  ;;  %v180_v39 = vpop.f32.mrb[1].mxu0 }
 0x239   :  { %v181_v40 = vadd.f32 %v212_v36, %v180_v39 }
 0x23a   :  { %191 = vst.msk [vmem:[#allocation7 + $0x8] sm:$0xff] %vm189_vm1, %v186_v38 }
 0x23b   :  { %190 = vst.msk [vmem:[#allocation7] sm:$0xff] %vm189_vm1, %v181_v40 }
 0x23c   :  { %304 = shalt.err (!%p301_p6)
}
 0x23d   :  { %s305_s4 = scalar_lea.hbm %s421_s5, 256 }
 0x23e   :  { %p306_p7 = scmp.ne.s32.totalorder %s421_s5, %s305_s4  ;;  %p309_p8 = scmp.lt.u32.totalorder %s305_s4, %s421_s5 }
 0x240   :  { %p311_p9 = pnand %p309_p8, %p306_p7 }
 0x242   :  { %314 = shalt.err (!%p311_p9)
}
 0x243   :  { %203 = dma.vmem_to_hbm [thread:$0]  %s198_s23, 256, %s421_s5, [#allocation4], %s322_s28, %s322_s28, %s323_s29  }
 0x244   :  { %319 = dma.done.wait [#allocation4], 256  }
 0x245   :  { %320 = vsyncadd [#allocation4], 4294967040 }
 0x246   :  { %207 = vsyncpa [#allocation3], 1 }
 0x247   :  { %208 = vsyncpa [#allocation6], 1 }
 0x248   :  { %209 = vsyncpa [#allocation4], 1 }

</bundles_post_ra>
